<compile_context>
chip_gen: v7x
topology: tpu7x:2x2x1
jax: 0.10.0
libtpu: 0.0.40
codegen_flags: <defaults>
</compile_context>

<pallas_src>
import functools
import math

import jax
import jax.numpy as jnp
from jax.experimental import pallas as pl
from jax.experimental.pallas import tpu as pltpu


def _mlp_kernel(x_ref, w1_ref, b1_ref, w2_ref, b2_ref, o_ref, *, compute_dtype):
    # x_ref : (tB, 48)  input rows for this grid step
    # w1_ref: (10, 48)  PyTorch layout (out_features, in_features)
    # b1_ref: (1, 10)
    # w2_ref: (1, 10)   PyTorch layout
    # b2_ref: (1, 1)
    # o_ref : (1, tB)   lane-dense output block (batch on the lane axis)
    x = x_ref[...].astype(compute_dtype)
    w1 = w1_ref[...].astype(compute_dtype)

    # h = x @ W1^T -> (tB, 10), f32 accumulation on the MXU (rhs contracted on
    # its last dim, i.e. the well-supported A @ B.T pattern).
    h = jax.lax.dot_general(
        x, w1, dimension_numbers=(((1,), (1,)), ((), ())),
        preferred_element_type=jnp.float32)
    h = jnp.maximum(h + b1_ref[...], 0.0)                      # bias + ReLU (VPU)

    # z = W2 @ h^T -> (1, tB): lane-dense straight out of the MXU (M=1, K=10),
    # so the final store is an unmasked full-lane store.
    z = jax.lax.dot_general(
        w2_ref[...], h, dimension_numbers=(((1,), (1,)), ((), ())),
        preferred_element_type=jnp.float32)
    z = z + b2_ref[...]                                        # (1,1) broadcast
    o_ref[...] = jax.nn.sigmoid(z).astype(o_ref.dtype)         # Sigmoid (EUP)


def triple_joint_dis(x, w1, b1, w2, b2, *, block_rows=1024,
                     compute_dtype=jnp.bfloat16):
    """TripleJointDis forward.

    x : (B, 48) float32, weights in PyTorch layout:
      w1 (10, 48), b1 (10,), w2 (1, 10), b2 (1,).  Returns (B, 1) float32.
    """
    B, K = x.shape
    assert K == 48 and w1.shape == (10, 48) and w2.shape == (1, 10)

    # Row-tile size: big enough to amortize per-step overhead, small enough to
    # fit every generation's scoped VMEM with double buffering (1024 rows of
    # lane-padded f32 -> ~0.5 MiB per buffer).
    if B <= block_rows:
        tb = B
    else:
        tb = max((block_rows // 128) * 128, 128)   # keep output blocks lane-aligned
    num_tiles = pl.cdiv(B, tb)

    b1r = b1.reshape(1, 10).astype(jnp.float32)
    b2r = b2.reshape(1, 1).astype(jnp.float32)

    kernel = functools.partial(_mlp_kernel, compute_dtype=compute_dtype)

    out = pl.pallas_call(
        kernel,
        out_shape=jax.ShapeDtypeStruct((1, B), x.dtype),
        grid=(num_tiles,),
        in_specs=[
            pl.BlockSpec((tb, 48), lambda i: (i, 0)),   # x: batch-tiled
            pl.BlockSpec((10, 48), lambda i: (0, 0)),   # W1: resident (constant index)
            pl.BlockSpec((1, 10),  lambda i: (0, 0)),   # b1: resident
            pl.BlockSpec((1, 10),  lambda i: (0, 0)),   # W2: resident
            pl.BlockSpec((1, 1),   lambda i: (0, 0)),   # b2: resident
        ],
        out_specs=pl.BlockSpec((1, tb), lambda i: (0, i)),      # lane-dense output
        compiler_params=pltpu.CompilerParams(
            dimension_semantics=("parallel",)),                 # megacore on v7x
        cost_estimate=pl.CostEstimate(
            flops=2 * B * 48 * 10 + 2 * B * 10,
            transcendentals=B,
            bytes_accessed=B * 48 * 4 + B * 4 + (10 * 48 + 10 + 10 + 1) * 4),
    )(x, w1, b1r, w2, b2r)

    # (1, B) -> (B, 1): same row-major flattening, so this is a free reshape.
    return out.reshape(B, 1)


def init_params(key):
    """PyTorch nn.Linear default init (U[-1/sqrt(fan_in), 1/sqrt(fan_in)]), PyTorch layout."""
    k1, k2, k3, k4 = jax.random.split(key, 4)
    bound1 = 1.0 / math.sqrt(48.0)
    bound2 = 1.0 / math.sqrt(10.0)
    w1 = jax.random.uniform(k1, (10, 48), jnp.float32, -bound1, bound1)
    b1 = jax.random.uniform(k2, (10,),    jnp.float32, -bound1, bound1)
    w2 = jax.random.uniform(k3, (1, 10),  jnp.float32, -bound2, bound2)
    b2 = jax.random.uniform(k4, (1,),     jnp.float32, -bound2, bound2)
    return w1, b1, w2, b2


def reference_f32(x, w1, b1, w2, b2):
    """Pure-f32 reference matching the PyTorch forward."""
    h = jnp.maximum(x @ w1.T + b1[None, :], 0.0)
    return jax.nn.sigmoid(h @ w2.T + b2[None, :])


def reference_matched(x, w1, b1, w2, b2):
    """Reference using the same bf16-operand / f32-accumulate policy as the kernel."""
    h = jnp.dot(x.astype(jnp.bfloat16), w1.astype(jnp.bfloat16).T,
                preferred_element_type=jnp.float32) + b1[None, :]
    h = jnp.maximum(h, 0.0)
    z = jnp.sum(h * w2[0][None, :], axis=-1, keepdims=True) + b2[None, :]
    return jax.nn.sigmoid(z)


if __name__ == "__main__":
    key = jax.random.PRNGKey(0)
    kx, kp = jax.random.split(key)
    w1, b1, w2, b2 = init_params(kp)

    # Small shape consistent with the module: a batch of 48-dim joint vectors.
    B = 64
    x = jax.random.normal(kx, (B, 48), jnp.float32)

    out = jax.block_until_ready(triple_joint_dis(x, w1, b1, w2, b2))
    assert out.shape == (B, 1)
    assert jnp.allclose(out, reference_matched(x, w1, b1, w2, b2),
                        atol=1e-3, rtol=1e-3), "mismatch vs matched-precision reference"
    assert jnp.allclose(out, reference_f32(x, w1, b1, w2, b2),
                        atol=1e-2), "mismatch vs f32 reference"

    # Exercise the multi-tile (pipelined, double-buffered) grid path as well.
    B2 = 2048
    x2 = jax.random.normal(jax.random.PRNGKey(1), (B2, 48), jnp.float32)
    out2 = jax.block_until_ready(
        triple_joint_dis(x2, w1, b1, w2, b2, block_rows=1024))
    assert out2.shape == (B2, 1)
    assert jnp.allclose(out2, reference_f32(x2, w1, b1, w2, b2), atol=1e-2)

    print("KERNEL_OK")
</pallas_src>

<mosaic_0001>
module attributes {stable_mosaic.version = 11 : i64} {
  func.func @_mlp_kernel(%arg0: i32, %arg1: memref<64x48xf32, #tpu.memory_space<vmem>>, %arg2: memref<10x48xf32, #tpu.memory_space<vmem>>, %arg3: memref<1x10xf32, #tpu.memory_space<vmem>>, %arg4: memref<1x10xf32, #tpu.memory_space<vmem>>, %arg5: memref<1x1xf32, #tpu.memory_space<vmem>>, %arg6: memref<1x64xf32, #tpu.memory_space<vmem>>) attributes {dimension_semantics = [#tpu.dimension_semantics<parallel>], iteration_bounds = array<i64: 1>, scalar_prefetch = 0 : i64, scratch_operands = 0 : i64, tpu.core_type = #tpu.core_type<tc>, window_params = [{transform_indices = @transform_0, window_bounds = array<i64: 64, 48>}, {pipeline_mode = #tpu.pipeline_mode<synchronous>, transform_indices = @transform_1, window_bounds = array<i64: 10, 48>}, {pipeline_mode = #tpu.pipeline_mode<synchronous>, transform_indices = @transform_2, window_bounds = array<i64: 1, 10>}, {pipeline_mode = #tpu.pipeline_mode<synchronous>, transform_indices = @transform_3, window_bounds = array<i64: 1, 10>}, {pipeline_mode = #tpu.pipeline_mode<synchronous>, transform_indices = @transform_4, window_bounds = array<i64: 1, 1>}, {transform_indices = @transform_5, window_bounds = array<i64: 1, 64>}]} {
    %c0 = arith.constant 0 : index
    %c0_0 = arith.constant 0 : index
    %0 = vector.load %arg1[%c0, %c0_0] : memref<64x48xf32, #tpu.memory_space<vmem>>, vector<64x48xf32>
    %1 = arith.truncf %0 : vector<64x48xf32> to vector<64x48xbf16>
    %c0_1 = arith.constant 0 : index
    %c0_2 = arith.constant 0 : index
    %2 = vector.load %arg2[%c0_1, %c0_2] : memref<10x48xf32, #tpu.memory_space<vmem>>, vector<10x48xf32>
    %3 = arith.truncf %2 : vector<10x48xf32> to vector<10x48xbf16>
    %cst = arith.constant dense<0.000000e+00> : vector<64x10xf32>
    %4 = tpu.matmul %1, %3, %cst {dimension_numbers = #tpu.dot_dimension_numbers<[1], [1], [0], [0], [0, 0, 1, 0], [], []>} : vector<64x48xbf16>, vector<10x48xbf16>, vector<64x10xf32> -> vector<64x10xf32>
    %c0_3 = arith.constant 0 : index
    %c0_4 = arith.constant 0 : index
    %5 = vector.load %arg3[%c0_3, %c0_4] : memref<1x10xf32, #tpu.memory_space<vmem>>, vector<1x10xf32>
    %6 = vector.broadcast %5 : vector<1x10xf32> to vector<64x10xf32>
    %7 = arith.addf %4, %6 : vector<64x10xf32>
    %cst_5 = arith.constant 0.000000e+00 : f32
    %8 = vector.broadcast %cst_5 : f32 to vector<64x10xf32>
    %9 = arith.maximumf %7, %8 : vector<64x10xf32>
    %c0_6 = arith.constant 0 : index
    %c0_7 = arith.constant 0 : index
    %10 = vector.load %arg4[%c0_6, %c0_7] : memref<1x10xf32, #tpu.memory_space<vmem>>, vector<1x10xf32>
    %cst_8 = arith.constant dense<0.000000e+00> : vector<1x64xf32>
    %11 = tpu.matmul %10, %9, %cst_8 {dimension_numbers = #tpu.dot_dimension_numbers<[1], [1], [0], [0], [0, 0, 1, 0], [], []>} : vector<1x10xf32>, vector<64x10xf32>, vector<1x64xf32> -> vector<1x64xf32>
    %c0_9 = arith.constant 0 : index
    %c0_10 = arith.constant 0 : index
    %12 = vector.load %arg5[%c0_9, %c0_10] : memref<1x1xf32, #tpu.memory_space<vmem>>, vector<1x1xf32>
    %13 = vector.broadcast %12 : vector<1x1xf32> to vector<1x64xf32>
    %14 = arith.addf %11, %13 : vector<1x64xf32>
    %15 = arith.negf %14 : vector<1x64xf32>
    %16 = math.exp %15 : vector<1x64xf32>
    %cst_11 = arith.constant 1.000000e+00 : f32
    %17 = vector.broadcast %cst_11 : f32 to vector<1x64xf32>
    %18 = arith.addf %17, %16 : vector<1x64xf32>
    %19 = arith.divf %17, %18 : vector<1x64xf32>
    %c0_12 = arith.constant 0 : index
    %c0_13 = arith.constant 0 : index
    %20 = vector.load %arg6[%c0_12, %c0_13] : memref<1x64xf32, #tpu.memory_space<vmem>>, vector<1x64xf32>
    tpu.vector_store %arg6[%c0_12, %c0_13], %19 {strides = array<i32>} : memref<1x64xf32, #tpu.memory_space<vmem>>, vector<1x64xf32>,
    return
  }
  func.func @transform_0(%arg0: i32) -> (i32, i32) {
    %c0_i32 = arith.constant 0 : i32
    %c0_i32_0 = arith.constant 0 : i32
    return %arg0, %c0_i32 : i32, i32
  }
  func.func @transform_1(%arg0: i32) -> (i32, i32) {
    %c0_i32 = arith.constant 0 : i32
    %c0_i32_0 = arith.constant 0 : i32
    %c0_i32_1 = arith.constant 0 : i32
    return %c0_i32, %c0_i32_0 : i32, i32
  }
  func.func @transform_2(%arg0: i32) -> (i32, i32) {
    %c0_i32 = arith.constant 0 : i32
    %c0_i32_0 = arith.constant 0 : i32
    %c0_i32_1 = arith.constant 0 : i32
    return %c0_i32, %c0_i32_0 : i32, i32
  }
  func.func @transform_3(%arg0: i32) -> (i32, i32) {
    %c0_i32 = arith.constant 0 : i32
    %c0_i32_0 = arith.constant 0 : i32
    %c0_i32_1 = arith.constant 0 : i32
    return %c0_i32, %c0_i32_0 : i32, i32
  }
  func.func @transform_4(%arg0: i32) -> (i32, i32) {
    %c0_i32 = arith.constant 0 : i32
    %c0_i32_0 = arith.constant 0 : i32
    %c0_i32_1 = arith.constant 0 : i32
    return %c0_i32, %c0_i32_0 : i32, i32
  }
  func.func @transform_5(%arg0: i32) -> (i32, i32) {
    %c0_i32 = arith.constant 0 : i32
    %c0_i32_0 = arith.constant 0 : i32
    return %c0_i32, %arg0 : i32, i32
  }
}

</mosaic_0001>

<bundles_post_ra>
// kernel: tpu_custom_call.1
= control target key start
LH: loop header
LB: loop body
LE: loop exit
PB: predicated region body
PF: predicated region fallthrough
CT: control target
= control target key end

     0   :  { %s482_s0 = inlined_call_operand.vmem [shape: f32[64,48], index: 0, kind: input, shape index: {}]   ;;  %s483_s1 = inlined_call_operand.vmem [shape: f32[10,48], index: 1, kind: input, shape index: {}]   ;;  %s484_s2 = inlined_call_operand.vmem [shape: f32[1,10], index: 2, kind: input, shape index: {}]   ;;  %s485_s3 = inlined_call_operand.vmem [shape: f32[1,10], index: 3, kind: input, shape index: {}]   ;;  %s486_s4 = inlined_call_operand.<no memory space> [shape: f32[1,1], index: 4, kind: input, shape index: {}]   ;;  %s487_s5 = inlined_call_operand.hbm [shape: f32[1,64], index: 5, kind: output, shape index: {}]  }
   0x1   :  { %v10_v0 = vstv %s486_s4 }
   0x2   :  { %11 = vst [vmem:[#allocation2] sm:$0x1] %v10_v0 }
   0x3   :  { %v36_v1 = vld [vmem:[%s483_s1] sm:$0xff]  ;;  %v37_v2 = vld [vmem:[%s483_s1 + $0x8] sm:$0x3]  ;;  %vm46_vm0 = vcmask 392192  }
   0x4   :  { %v24_v3 = vld [vmem:[%s482_s0] sm:$0xff]  ;;  %v38_v4 = vpack.c.bf16 %v37_v2, %v36_v1  ;;  %v25_v5 = vld [vmem:[%s482_s0 + $0x8] sm:$0xff] }
   0x5   :  { %v32_v6 = vpack.c.bf16 %v25_v5, %v24_v3 }
   0x6   :  { %340 = vmatprep.subr.msk.bf16.mxu0 %vm46_vm0, %v38_v4  ;;  %v60_v7 = vsel %vm46_vm0, %v38_v4, 0 }
   0x7   :  { %12 = vsyncpa [#allocation4], 0  ;;  %296 = vmatpush3.bf16.xpose.msra.mxu0 %v60_v7  ;;  %297 = vmatprep.mubr.msk.bf16.mxu0 %vm46_vm0, %v32_v6  ;;  %v26_v8 = vld [vmem:[%s482_s0 + $0x10] sm:$0xff]  ;;  %v27_v9 = vld [vmem:[%s482_s0 + $0x18] sm:$0xff]  ;;  %v375_v17 = vmov 0.0|0.0   ;;  %vm376_vm1 = vmmov 0   ;;  %v142_v52 = vlaneseq }
   0x8   :  { %v28_v10 = vld [vmem:[%s482_s0 + $0x20] sm:$0xff]  ;;  %v29_v11 = vld [vmem:[%s482_s0 + $0x28] sm:$0xff]  ;;  %v33_v12 = vpack.c.bf16 %v27_v9, %v26_v8  ;;  %v30_v14 = vld [vmem:[%s482_s0 + $0x30] sm:$0xff]  ;;  %324 = vmatprep.subr.bf16.mxu1 %v375_v17  ;;  %v377_v18 = vmov 0.0   ;;  %v378_v20 = vmov 0   ;;  %vm146_vm2 = vcmask 80896  }
   0x9   :  { %v34_v13 = vpack.c.bf16 %v29_v11, %v28_v10  ;;  %v31_v15 = vld [vmem:[%s482_s0 + $0x38] sm:$0xff]  ;;  %321 = vmatprep.mubr.msk.f32.mxu1 %vm376_vm1, %v377_v18  ;;  %v136_v19 = vld [vmem:[#allocation2] sm:$0x1]  ;;  %346 = vset.pattern.permute.xlu0 %v378_v20  ;;  %vm454_vm3 = vmpackc.low %vm146_vm2, %vm146_vm2  ;;  %v143_v53 = vshrl.u32 %v142_v52, 7  ;;  %s379_s15 = smov [#allocation3]   ;;  %vm250_vm4 = vcmask 516096  }
   0xa   :  { %v35_v16 = vpack.c.bf16 %v31_v15, %v30_v14  ;;  %139 = vperm.xlu0 %346, %v136_v19   ;;  %v266_v21 = vld [vmem:[%s484_s2] ss:$0 sm:$0xff]  ;;  %s258_s16 = sshll.u32 %s379_s15, 4  ;;  %s259_s16 = int_to_ptr.vmem [resolvable:$true] %s258_s16 }
   0xb   :  { %v135_v51 = vld [vmem:[%s485_s3] sm:$0x1]  ;;  %v144_v54 = vsub.s32 0, %v143_v53  ;;  %s351_s3 = scalar_lea.vmem %s259_s16, 16  ;;  %s355_s17 = scalar_lea.vmem %s259_s16, 32 }
   0xc   :  { %p352_p0 = scmp.ne.s32.totalorder %s259_s16, %s351_s3  ;;  %p356_p1 = scmp.lt.s32.totalorder %s259_s16, %s259_s16 }
   0xd   :  { %p357_p2 = scmp.lt.s32.totalorder %s355_s17, %s351_s3 }
   0xe   :  { %298 = vmatmul.mubr.msk.bf16.vlgmr.msra.gmra.mrb[0].mxu0 %vm46_vm0, %v33_v12 }
   0xf   :  { %301 = vmatprep.mubr.msk.bf16.mxu0 %vm46_vm0, %v34_v13  ;;  %p358_p3 = por %p357_p2, %p356_p1 }
  0x11   :  { %p359_p4 = pnand %p358_p3, %p352_p0 }
  0x16   :  { %302 = vmatmul.mubr.msk.bf16.gmra.mrb[4].mxu0 %vm46_vm0, %v35_v16 }
  0x89   :  { %v140_v55 = vpop.permute.xlu0 %139 }
  0x8a   :  { %v145_v56 = vrot.slane %v140_v55, %v144_v54 }
  0xe1   :  { %v299_v22 = vpop.f32.mrb[0].mxu0 }
  0xe2   :  { %v105_v23 = vadd.f32 %v299_v22, %v266_v21  ;;  %v96_v24 = vpop.f32.mrb[1].mxu0 }
  0xe3   :  { %v97_v25 = vadd.f32 %v266_v21, %v96_v24  ;;  %v300_v26 = vpop.f32.mrb[2].mxu0 }
  0xe4   :  { %v108_v27 = vadd.f32 %v300_v26, %v266_v21  ;;  %v99_v28 = vpop.f32.mrb[3].mxu0  ;;  %v129_v30 = vmax.f32 %v105_v23, 0.0 }
  0xe5   :  { %v100_v29 = vadd.f32 %v266_v21, %v99_v28  ;;  %v127_v32 = vmax.f32 %v97_v25, 0.0 }
  0xe6   :  { %v130_v31 = vmax.f32 %v108_v27, 0.0 }
  0xe7   :  { %v128_v33 = vmax.f32 %v100_v29, 0.0 }
  0xe8   :  { %v329_v34 = vpack.c.bf16 %v130_v31, %v129_v30 }
  0xe9   :  { %v325_v36 = vpack.c.bf16 %v128_v33, %v127_v32  ;;  %v303_v37 = vpop.f32.mrb[4].mxu0 }
  0xea   :  { %v121_v38 = vadd.f32 %v303_v37, %v266_v21  ;;  %v112_v39 = vpop.f32.mrb[5].mxu0 }
  0xeb   :  { %327 = vmatpush3.bf16.xpose.msk.msra.mxu1 %vm454_vm3, %v325_v36  ;;  %v113_v40 = vadd.f32 %v266_v21, %v112_v39  ;;  %v304_v41 = vpop.f32.mrb[6].mxu0 }
  0xec   :  { %v133_v42 = vmax.f32 %v121_v38, 0.0  ;;  %v124_v43 = vadd.f32 %v304_v41, %v266_v21  ;;  %v115_v44 = vpop.f32.mrb[7].mxu0  ;;  %328 = vmatprep.subr.bf16.mxu1 %v375_v17 }
  0xed   :  { %v131_v45 = vmax.f32 %v113_v40, 0.0  ;;  %v116_v46 = vadd.f32 %v266_v21, %v115_v44 }
  0xee   :  { %v134_v47 = vmax.f32 %v124_v43, 0.0 }
  0xef   :  { %v132_v48 = vmax.f32 %v116_v46, 0.0 }
  0xf0   :  { %v337_v49 = vpack.c.bf16 %v134_v47, %v133_v42 }
  0xf1   :  { %v333_v50 = vpack.c.bf16 %v132_v48, %v131_v45 }
  0xf3   :  { %331 = vmatpush3.bf16.xpose.msk.msra.mxu1 %vm454_vm3, %v329_v34 }
  0xf4   :  { %332 = vmatprep.subr.bf16.mxu1 %v375_v17 }
  0xfb   :  { %335 = vmatpush3.bf16.xpose.msk.msra.mxu1 %vm454_vm3, %v333_v50 }
  0xfc   :  { %336 = vmatprep.subr.bf16.mxu1 %v375_v17 }
 0x103   :  { %339 = vmatpush3.bf16.xpose.msk.msra.mxu1 %vm454_vm3, %v337_v49 }
 0x10a   :  { %322 = vmatmul.mubr.msk.f32.vlgmr.msra.gmra.mrb[0].mxu1 %vm146_vm2, %v135_v51 }
 0x1dd   :  { %v240_v57 = vpop.f32.mrb[0].mxu1 }
 0x1de   :  { %v241_v58 = vadd.f32 %v240_v57, %v145_v56  ;;  %v323_v59 = vpop.f32.mrb[1].mxu1 }
 0x1e0   :  { %v280_v60 = vmul.f32 -1.442695, %v241_v58 }
 0x1e2   :  { %347 = vpow2.f32 %v280_v60 }
 0x1ec   :  { %v348_v61 = vpop.eup %347 }
 0x1ed   :  { %v247_v62 = vadd.f32 1.0, %v348_v61 }
 0x1ef   :  { %349 = vrcp.f32 %v247_v62 }
 0x1f9   :  { %v350_v63 = vpop.eup %349 }
 0x1fa   :  { %251 = vst.msk [vmem:[#allocation3] sm:$0x1] %vm250_vm4, %v350_v63 }
 0x1fb   :  { %362 = shalt.err (!%p359_p4)
}
 0x1fc   :  { %s363_s20 = scalar_lea.hbm %s487_s5, 16 }
 0x1fd   :  { %p364_p5 = scmp.ne.s32.totalorder %s487_s5, %s363_s20  ;;  %p367_p6 = scmp.lt.u32.totalorder %s363_s20, %s487_s5 }
 0x1ff   :  { %p369_p7 = pnand %p367_p6, %p364_p5 }
 0x201   :  { %372 = shalt.err (!%p369_p7)
}
 0x202   :  { %261 = dma.vmem_to_hbm [thread:$0]  %s259_s16, 16, %s487_s5, [#allocation4]  }
 0x203   :  { %373 = dma.done.wait [#allocation4], 16  }
 0x204   :  { %374 = vsyncadd [#allocation4], 4294967280 }
 0x205   :  { %265 = vsyncpa [#allocation4], 1 }

</bundles_post_ra>
